<compile_context>
chip_gen: v7x
topology: tpu7x:2x2x1
jax: 0.10.0
libtpu: 0.0.40
codegen_flags: <defaults>
</compile_context>

<pallas_src>
from functools import partial

import jax
import jax.numpy as jnp
from jax.experimental import pallas as pl
from jax.experimental.pallas import tpu as pltpu


# ---------------------------------------------------------------------------
# Kernels
# ---------------------------------------------------------------------------

def decoder_b_fused_kernel(x_ref, w1_ref, b1_ref, w2_ref, b2_ref, o_ref, *,
                           matmul_dtype):
    """Single-column-tile variant: both Linears fused, no VMEM scratch."""
    x = x_ref[...].astype(matmul_dtype)                       # MXU operands
    h = jnp.dot(x, w1_ref[...], preferred_element_type=jnp.float32)
    h = h + b1_ref[...]                                       # f32 bias add
    # Dropout(0.5): identity in eval mode.
    # TODO(synk): training-mode dropout (pltpu.prng_seed + prng_random_bits
    #             mask with 2x rescale) is not implemented.
    h = h - jnp.tanh(h)                                       # Tanhshrink, f32
    out = jnp.dot(h.astype(matmul_dtype), w2_ref[...],
                  preferred_element_type=jnp.float32)
    out = out + b2_ref[...]
    o_ref[...] = out.astype(o_ref.dtype)


def decoder_b_tiled_kernel(x_ref, w1_ref, b1_ref, w2_ref, b2_ref, o_ref, h_ref,
                           *, matmul_dtype):
    """Column-tiled W2 variant: h cached in VMEM scratch across column tiles."""
    j = pl.program_id(1)

    @pl.when(j == 0)
    def _():
        # First Linear + Dropout(eval) + Tanhshrink, once per row tile.
        x = x_ref[...].astype(matmul_dtype)
        h = jnp.dot(x, w1_ref[...], preferred_element_type=jnp.float32)
        h = h + b1_ref[...]
        # Dropout(0.5): identity in eval mode (see TODO in fused kernel).
        h = h - jnp.tanh(h)
        h_ref[...] = h.astype(h_ref.dtype)

    # Second Linear on the cached activations, one output-column tile at a time.
    out = jnp.dot(h_ref[...], w2_ref[...], preferred_element_type=jnp.float32)
    out = out + b2_ref[...]
    o_ref[...] = out.astype(o_ref.dtype)


# ---------------------------------------------------------------------------
# Tile selection / VMEM budgeting
# ---------------------------------------------------------------------------

def _vmem_budget_bytes():
    """~85% of this chip's physical VMEM (64 MiB fallback == v7x per-core)."""
    cap = 64 * 1024 * 1024
    try:
        info = pltpu.get_tpu_info()
        cap = int(getattr(info, "vmem_capacity_bytes", cap))
    except Exception:
        pass
    return int(0.85 * cap)


def _footprint_bytes(D, tile_b, tile_n, io_bytes, mm_bytes):
    """VMEM estimate with Buffered(1) on constant-index operands."""
    resident = (tile_n == D)
    f = D * D * mm_bytes + D * 4                          # W1 + b1 (Buffered(1))
    if resident:
        f += D * D * mm_bytes + D * 4                     # W2 + b2 (Buffered(1))
    else:
        f += 2 * D * tile_n * mm_bytes + 2 * tile_n * 4   # double-buffered tiles
    f += 2 * tile_b * D * io_bytes                        # x row tiles
    f += 2 * tile_b * tile_n * io_bytes                   # out tiles
    if not resident:
        f += tile_b * D * mm_bytes                        # cached h scratch
    return f


def _pick_tile_b(B, ceiling):
    cands = [c for c in (1024, 512, 256, 128, 64, 32, 16, 8)
             if c <= ceiling and c <= B and B % c == 0]
    # Prefer >= 4 row tiles (2 grid steps per TensorCore on v7x so x/out DMA
    # stays double-buffered), then >= 2, else take the whole batch.
    for min_steps in (4, 2):
        for c in cands:
            if B // c >= min_steps:
                return c
    return B


def _choose_tiles(B, D, io_bytes, mm_bytes, budget):
    # Preferred: W2 fully resident (single column tile, fused kernel, W2
    # streamed from HBM exactly once).  Shrink the batch tile before giving up.
    for tb_ceiling in (512, 256, 128, 64, 32, 16, 8):
        tb = _pick_tile_b(B, tb_ceiling)
        if _footprint_bytes(D, tb, D, io_bytes, mm_bytes) <= budget:
            return tb, D
        if tb >= B:
            break
    # Fallback: column-tile W2.  Prefer 256-multiples (v6e/v7x MXU is 256
    # wide); shrink tile_b before dropping tile_n below 256.  Larger row tiles
    # (up to 1024) raise arithmetic intensity on the re-streamed W2 bytes.
    tn_cands = [c for c in (512, 256) if D % c == 0]
    if D % 128 == 0:
        tn_cands.append(128)
    if not tn_cands:
        tn_cands = [D]
    for tn in tn_cands:
        for tb_ceiling in (1024, 512, 256, 128, 64, 32, 16, 8):
            tb = _pick_tile_b(B, tb_ceiling)
            if _footprint_bytes(D, tb, tn, io_bytes, mm_bytes) <= budget:
                return tb, tn
            if tb >= B:
                break
    # TODO(synk): add a contraction-axis (K-tiled) variant with an f32 VMEM
    #             accumulator for D so large that even a single-buffered W1
    #             slab does not fit VMEM.
    return _pick_tile_b(B, 128), tn_cands[-1]


# ---------------------------------------------------------------------------
# Wrapper
# ---------------------------------------------------------------------------

def decoder_b(x, w1, b1, w2, b2, *, tile_b=None, tile_n=None,
              matmul_dtype=jnp.bfloat16):
    """x: (B, D); w1, w2: (D, D) pre-transposed (in, out); b1, b2: (D,)."""
    B, D = x.shape

    io_bytes = jnp.dtype(x.dtype).itemsize
    mm_bytes = jnp.dtype(matmul_dtype).itemsize
    budget = _vmem_budget_bytes()

    auto_tb, auto_tn = _choose_tiles(B, D, io_bytes, mm_bytes, budget)
    if tile_b is None:
        tile_b = auto_tb
    if tile_n is None:
        tile_n = auto_tn
    assert B % tile_b == 0 and D % tile_n == 0

    # MXU operands in matmul_dtype (bf16 default); biases stay f32 since the
    # bias add + tanhshrink are applied to the f32 accumulator.
    w1_mm = w1.astype(matmul_dtype)
    w2_mm = w2.astype(matmul_dtype)
    b1_2d = b1.reshape(1, D).astype(jnp.float32)
    b2_2d = b2.reshape(1, D).astype(jnp.float32)

    footprint = _footprint_bytes(D, tile_b, tile_n, io_bytes, mm_bytes)
    vmem_limit = int(min(budget, max(32 * 1024 * 1024, int(footprint * 1.5))))

    n_row_tiles = B // tile_b
    w2_passes = 1 if tile_n == D else n_row_tiles
    cost = pl.CostEstimate(
        flops=2 * 2 * B * D * D,
        transcendentals=B * D,
        bytes_accessed=int(
            B * D * io_bytes                      # x read
            + D * D * mm_bytes                    # W1 (fetched once)
            + w2_passes * D * D * mm_bytes        # W2 (per row tile if tiled)
            + 2 * D * 4                           # biases
            + B * D * io_bytes),                  # out write
    )

    if tile_n == D:
        # Fused single-column-tile path: 1-D grid over row tiles, no scratch,
        # all weights/biases single-buffered and fetched once.
        grid_spec = pltpu.PrefetchScalarGridSpec(
            num_scalar_prefetch=0,
            grid=(n_row_tiles,),
            in_specs=[
                pl.BlockSpec((tile_b, D), lambda i: (i, 0)),
                pl.BlockSpec((D, D), lambda i: (0, 0),
                             pipeline_mode=pl.Buffered(1)),
                pl.BlockSpec((1, D), lambda i: (0, 0),
                             pipeline_mode=pl.Buffered(1)),
                pl.BlockSpec((D, D), lambda i: (0, 0),
                             pipeline_mode=pl.Buffered(1)),
                pl.BlockSpec((1, D), lambda i: (0, 0),
                             pipeline_mode=pl.Buffered(1)),
            ],
            out_specs=pl.BlockSpec((tile_b, D), lambda i: (i, 0)),
        )
        kernel = partial(decoder_b_fused_kernel, matmul_dtype=matmul_dtype)
        dims = ("parallel",)
    else:
        # Column-tiled W2 path: cache h per row tile, stream W2 column tiles.
        grid_spec = pltpu.PrefetchScalarGridSpec(
            num_scalar_prefetch=0,
            grid=(n_row_tiles, D // tile_n),
            in_specs=[
                pl.BlockSpec((tile_b, D), lambda i, j: (i, 0)),
                pl.BlockSpec((D, D), lambda i, j: (0, 0),
                             pipeline_mode=pl.Buffered(1)),
                pl.BlockSpec((1, D), lambda i, j: (0, 0),
                             pipeline_mode=pl.Buffered(1)),
                pl.BlockSpec((D, tile_n), lambda i, j: (0, j)),
                pl.BlockSpec((1, tile_n), lambda i, j: (0, j)),
            ],
            out_specs=pl.BlockSpec((tile_b, tile_n), lambda i, j: (i, j)),
            scratch_shapes=[pltpu.VMEM((tile_b, D), matmul_dtype)],
        )
        kernel = partial(decoder_b_tiled_kernel, matmul_dtype=matmul_dtype)
        dims = ("parallel", "arbitrary")

    return pl.pallas_call(
        kernel,
        out_shape=jax.ShapeDtypeStruct((B, D), x.dtype),
        grid_spec=grid_spec,
        compiler_params=pltpu.CompilerParams(
            dimension_semantics=dims,
            vmem_limit_bytes=vmem_limit,
        ),
        cost_estimate=cost,
    )(x, w1_mm, b1_2d, w2_mm, b2_2d)


# ---------------------------------------------------------------------------
# Reference + demo
# ---------------------------------------------------------------------------

def orthogonal(key, n):
    """Deterministic orthogonal init (gain=1), like nn.init.orthogonal_."""
    a = jax.random.normal(key, (n, n), dtype=jnp.float32)
    q, r = jnp.linalg.qr(a)
    q = q * jnp.sign(jnp.diag(r))[None, :]
    return q


def reference(x, w1, b1, w2, b2, matmul_dtype=jnp.float32):
    h = jnp.dot(x.astype(matmul_dtype), w1.astype(matmul_dtype),
                preferred_element_type=jnp.float32) + b1
    h = h - jnp.tanh(h)
    out = jnp.dot(h.astype(matmul_dtype), w2.astype(matmul_dtype),
                  preferred_element_type=jnp.float32) + b2
    return out.astype(x.dtype)


if __name__ == "__main__":
    # Small but lane-dense demo: D multiple of 128 (full MXU/vreg lanes), B
    # large enough that the row grid has >= 4 steps (double-buffering + v7x
    # dual-TensorCore sharding).  D=128 takes the fused (resident-W2) path.
    B, D = 256, 128
    key = jax.random.PRNGKey(0)
    kx, k1, k2 = jax.random.split(key, 3)

    x = jax.random.normal(kx, (B, D), dtype=jnp.float32)

    # nn.Linear weights (orthogonal, gain=1), stored transposed as (in, out);
    # biases zero-initialized, as in init_weights.
    w1 = orthogonal(k1, D).T
    b1 = jnp.zeros((D,), dtype=jnp.float32)
    w2 = orthogonal(k2, D).T
    b2 = jnp.zeros((D,), dtype=jnp.float32)

    # Default (performance) path: bf16 MXU operands, f32 accumulation.
    out = jax.block_until_ready(decoder_b(x, w1, b1, w2, b2))
    assert out.shape == (B, D)

    ref_mixed = reference(x, w1, b1, w2, b2, matmul_dtype=jnp.bfloat16)
    ref_f32 = reference(x, w1, b1, w2, b2, matmul_dtype=jnp.float32)
    assert jnp.allclose(out, ref_mixed, atol=2e-3, rtol=2e-3), "bf16 path mismatch"
    assert jnp.allclose(out, ref_f32, atol=5e-2, rtol=5e-2), "bf16 path far from f32"

    # f32-operand path (loose tolerance: MXU f32 emulation vs XLA default
    # precision may differ slightly, both are well within 2e-2 here).
    out_f32 = jax.block_until_ready(
        decoder_b(x, w1, b1, w2, b2, matmul_dtype=jnp.float32))
    assert jnp.allclose(out_f32, ref_f32, atol=2e-2, rtol=2e-2), "f32 path mismatch"

    print("KERNEL_OK")
</pallas_src>

<mosaic_0001>
module attributes {stable_mosaic.version = 11 : i64} {
  func.func @decoder_b_fused_kernel(%arg0: i32, %arg1: memref<64x128xf32, #tpu.memory_space<vmem>>, %arg2: memref<128x128xbf16, #tpu.memory_space<vmem>>, %arg3: memref<1x128xf32, #tpu.memory_space<vmem>>, %arg4: memref<128x128xbf16, #tpu.memory_space<vmem>>, %arg5: memref<1x128xf32, #tpu.memory_space<vmem>>, %arg6: memref<64x128xf32, #tpu.memory_space<vmem>>) attributes {dimension_semantics = [#tpu.dimension_semantics<parallel>], iteration_bounds = array<i64: 4>, scalar_prefetch = 0 : i64, scratch_operands = 0 : i64, tpu.core_type = #tpu.core_type<tc>, window_params = [{transform_indices = @transform_0, window_bounds = array<i64: 64, 128>}, {pipeline_mode = #tpu.pipeline_mode<synchronous>, transform_indices = @transform_1, window_bounds = array<i64: 128, 128>}, {pipeline_mode = #tpu.pipeline_mode<synchronous>, transform_indices = @transform_2, window_bounds = array<i64: 1, 128>}, {pipeline_mode = #tpu.pipeline_mode<synchronous>, transform_indices = @transform_3, window_bounds = array<i64: 128, 128>}, {pipeline_mode = #tpu.pipeline_mode<synchronous>, transform_indices = @transform_4, window_bounds = array<i64: 1, 128>}, {transform_indices = @transform_5, window_bounds = array<i64: 64, 128>}]} {
    %c0 = arith.constant 0 : index
    %c0_0 = arith.constant 0 : index
    %0 = vector.load %arg1[%c0, %c0_0] : memref<64x128xf32, #tpu.memory_space<vmem>>, vector<64x128xf32>
    %1 = arith.truncf %0 : vector<64x128xf32> to vector<64x128xbf16>
    %c0_1 = arith.constant 0 : index
    %c0_2 = arith.constant 0 : index
    %2 = vector.load %arg2[%c0_1, %c0_2] : memref<128x128xbf16, #tpu.memory_space<vmem>>, vector<128x128xbf16>
    %cst = arith.constant dense<0.000000e+00> : vector<64x128xf32>
    %3 = tpu.matmul %1, %2, %cst {dimension_numbers = #tpu.dot_dimension_numbers<[1], [0], [0], [1], [0, 0, 1, 1], [], []>} : vector<64x128xbf16>, vector<128x128xbf16>, vector<64x128xf32> -> vector<64x128xf32>
    %c0_3 = arith.constant 0 : index
    %c0_4 = arith.constant 0 : index
    %4 = vector.load %arg3[%c0_3, %c0_4] : memref<1x128xf32, #tpu.memory_space<vmem>>, vector<1x128xf32>
    %5 = vector.broadcast %4 : vector<1x128xf32> to vector<64x128xf32>
    %6 = arith.addf %3, %5 : vector<64x128xf32>
    %7 = math.tanh %6 : vector<64x128xf32>
    %8 = arith.subf %6, %7 : vector<64x128xf32>
    %9 = arith.truncf %8 : vector<64x128xf32> to vector<64x128xbf16>
    %c0_5 = arith.constant 0 : index
    %c0_6 = arith.constant 0 : index
    %10 = vector.load %arg4[%c0_5, %c0_6] : memref<128x128xbf16, #tpu.memory_space<vmem>>, vector<128x128xbf16>
    %cst_7 = arith.constant dense<0.000000e+00> : vector<64x128xf32>
    %11 = tpu.matmul %9, %10, %cst_7 {dimension_numbers = #tpu.dot_dimension_numbers<[1], [0], [0], [1], [0, 0, 1, 1], [], []>} : vector<64x128xbf16>, vector<128x128xbf16>, vector<64x128xf32> -> vector<64x128xf32>
    %c0_8 = arith.constant 0 : index
    %c0_9 = arith.constant 0 : index
    %12 = vector.load %arg5[%c0_8, %c0_9] : memref<1x128xf32, #tpu.memory_space<vmem>>, vector<1x128xf32>
    %13 = vector.broadcast %12 : vector<1x128xf32> to vector<64x128xf32>
    %14 = arith.addf %11, %13 : vector<64x128xf32>
    %c0_10 = arith.constant 0 : index
    %c0_11 = arith.constant 0 : index
    %15 = vector.load %arg6[%c0_10, %c0_11] : memref<64x128xf32, #tpu.memory_space<vmem>>, vector<64x128xf32>
    tpu.vector_store %arg6[%c0_10, %c0_11], %14 {strides = array<i32>} : memref<64x128xf32, #tpu.memory_space<vmem>>, vector<64x128xf32>,
    return
  }
  func.func @transform_0(%arg0: i32) -> (i32, i32) {
    %c0_i32 = arith.constant 0 : i32
    %c0_i32_0 = arith.constant 0 : i32
    return %arg0, %c0_i32 : i32, i32
  }
  func.func @transform_1(%arg0: i32) -> (i32, i32) {
    %c0_i32 = arith.constant 0 : i32
    %c0_i32_0 = arith.constant 0 : i32
    %c0_i32_1 = arith.constant 0 : i32
    return %c0_i32, %c0_i32_0 : i32, i32
  }
  func.func @transform_2(%arg0: i32) -> (i32, i32) {
    %c0_i32 = arith.constant 0 : i32
    %c0_i32_0 = arith.constant 0 : i32
    %c0_i32_1 = arith.constant 0 : i32
    return %c0_i32, %c0_i32_0 : i32, i32
  }
  func.func @transform_3(%arg0: i32) -> (i32, i32) {
    %c0_i32 = arith.constant 0 : i32
    %c0_i32_0 = arith.constant 0 : i32
    %c0_i32_1 = arith.constant 0 : i32
    return %c0_i32, %c0_i32_0 : i32, i32
  }
  func.func @transform_4(%arg0: i32) -> (i32, i32) {
    %c0_i32 = arith.constant 0 : i32
    %c0_i32_0 = arith.constant 0 : i32
    %c0_i32_1 = arith.constant 0 : i32
    return %c0_i32, %c0_i32_0 : i32, i32
  }
  func.func @transform_5(%arg0: i32) -> (i32, i32) {
    %c0_i32 = arith.constant 0 : i32
    %c0_i32_0 = arith.constant 0 : i32
    return %arg0, %c0_i32 : i32, i32
  }
}

</mosaic_0001>

<bundles_post_ra>
// kernel: tpu_custom_call.1
= control target key start
LH: loop header
LB: loop body
LE: loop exit
PB: predicated region body
PF: predicated region fallthrough
CT: control target
= control target key end

     0   :  { %10 = vsyncpa [#allocation3], 0  ;;  %s1351_s0 = inlined_call_operand.hbm [shape: f32[256,128], index: 0, kind: input, shape index: {}]   ;;  %s1352_s1 = inlined_call_operand.hbm [shape: bf16[128,128], index: 1, kind: input, shape index: {}]   ;;  %s1353_s2 = inlined_call_operand.vmem [shape: f32[1,128], index: 2, kind: input, shape index: {}]   ;;  %s1354_s3 = inlined_call_operand.hbm [shape: bf16[128,128], index: 3, kind: input, shape index: {}]   ;;  %s1355_s4 = inlined_call_operand.vmem [shape: f32[1,128], index: 4, kind: input, shape index: {}]   ;;  %s1356_s5 = inlined_call_operand.hbm [shape: f32[256,128], index: 5, kind: output, shape index: {}]  }
   0x1   :  { %12 = vsyncpa [#allocation3 + $0x1], 0 }
   0x2   :  { %13 = vsyncpa [#allocation6], 0 }
   0x3   :  { %14 = vsyncpa [#allocation4], 0 }
   0x4   :  { %16 = vsyncpa [#allocation4 + $0x1], 0  ;;  %s1106_s18 = smov 0   ;;  %s1108_s19 = smov 0  }
   0x5   :  { %s1110_s20 = smov 0   ;;  %s1112_s21 = smov 0  }
   0x6 LB: > { %s1127_s22 = sadd.s32 4294967295, %s1064_s21   ;;  %s693_s23 = sadd.s32 4294967294, %s1064_s21   ;;  %s1064_s21 = sphi %s1112_s21, %s1375_s21   ;;  %s1060_s20 = sphi %s1110_s20, %s1374_s20   ;;  %s1056_s19 = sphi %s1108_s19, %s1373_s19   ;;  %s1052_s18 = sphi %s1106_s18, %s1372_s18  }
   0x7   : > { %p42_p0 = scmp.ne.s32.totalorder %s1056_s19, %s1052_s18  ;;  %p1357_p1 = scmp.eq.s32.totalorder %s1127_s22, 0 }
   0x8   : > { %p156_p3 = scmp.eq.s32.totalorder %s693_s23, 3  ;;  %p694_p5 = scmp.ge.s32.totalorder %s1064_s21, 1 }
   0x9   : > { %p1136_p4 = por %p1357_p1, %p42_p0  ;;  %p163_p7 = scmp.lt.s32.totalorder %s1064_s21, 5 }
   0xa   : > { %p1141_p6 = por %p156_p3, %p42_p0  ;;  %s1066_s27 = smov [#allocation5]  }
   0xb   : > { %s1360_s24 = scalar_select %p1136_p4, 1, 0 }
   0xc   : > { %s1361_s25 = scalar_select %p1141_p6, 1, 0 }
   0xd   : > { %p1146_p8 = pnand %p694_p5, %p163_p7  ;;  %s175_s28 = sshll.u32 %s1066_s27, 4  ;;  %s176_s28 = int_to_ptr.vmem [resolvable:$true] %s175_s28 }
   0xe   : > { %s1067_s30 = smov [#allocation7]   ;;  %s908_s9 = scalar_lea.hbm %s1352_s1, 1024 }
   0xf   : > { %s1362_s26 = scalar_select %p1146_p8, 1, 0 }
  0x10   : > { %p815_p9 = pneg %p1146_p8  ;;  %s191_s6 = sshll.u32 %s1067_s30, 4  ;;  %s1158_s6 = int_to_ptr.vmem [resolvable:$true] %s191_s6 }
  0x11   : > { %p909_p11 = scmp.ne.s32.totalorder %s1352_s1, %s908_s9  ;;  %p915_p3 = scmp.lt.u32.totalorder %s908_s9, %s1352_s1 }
  0x12   : > { %p1154_p10 = pnand %p815_p9, %p1357_p1 }
  0x14   : > { %p910_p12 = pneg %p1154_p10 }
  0x16   : > { %p911_p13 = pnand %p910_p12, %p909_p11 }
  0x18   : > { %p912_p0 = pneg %p911_p13 }
  0x1a   : > { %p917_p5 = pnand %p915_p3, %p912_p0 }
  0x1c   : > { %920 = shalt.err (!%p917_p5)
}
  0x1d   : > { %s921_s14 = scalar_lea.vmem %s176_s28, 1024  ;;  %p929_p2 = scmp.lt.s32.totalorder %s176_s28, %s176_s28 }
  0x1e   : > { %p922_p7 = scmp.ne.s32.totalorder %s176_s28, %s921_s14  ;;  %p930_p6 = scmp.lt.s32.totalorder %s921_s14, %s921_s14 }
  0x20   : > { %p924_p9 = pnand %p922_p7, %p910_p12  ;;  %p931_p4 = por %p930_p6, %p929_p2 }
  0x22   : > { %p925_p1 = pneg %p924_p9 }
  0x24   : > { %p932_p8 = pnand %p931_p4, %p925_p1 }
  0x26   : > { %935 = shalt.err (!%p932_p8)
}
  0x27   : > { %s1068_s15 = smov 64   ;;  %s1069_s16 = smov 4  }
  0x28   : > { %818 = dma.hbm_to_vmem [thread:$0]  (!%p1154_p10), %s1352_s1, 1024, %s176_s28, [#allocation6], %s1068_s15, %s1068_s15, %s1069_s16  }
  0x29   : > { %s936_s7 = scalar_lea.hbm %s1354_s3, 1024 }
  0x2a   : > { %p937_p11 = scmp.ne.s32.totalorder %s1354_s3, %s936_s7  ;;  %p943_p4 = scmp.lt.u32.totalorder %s936_s7, %s1354_s3 }
  0x2c   : > { %p939_p1 = pnand %p937_p11, %p910_p12 }
  0x2e   : > { %p940_p2 = pneg %p939_p1 }
  0x30   : > { %p945_p6 = pnand %p943_p4, %p940_p2 }
  0x32   : > { %948 = shalt.err (!%p945_p6)
}
  0x33   : > { %s949_s28 = scalar_lea.vmem %s1158_s6, 1024  ;;  %p957_p3 = scmp.lt.s32.totalorder %s1158_s6, %s1158_s6 }
  0x34   : > { %p950_p8 = scmp.ne.s32.totalorder %s1158_s6, %s949_s28  ;;  %p958_p5 = scmp.lt.s32.totalorder %s949_s28, %s949_s28 }
  0x36   : > { %p952_p13 = pnand %p950_p8, %p910_p12  ;;  %p959_p7 = por %p958_p5, %p957_p3 }
  0x38   : > { %p953_p0 = pneg %p952_p13 }
  0x3a   : > { %p960_p9 = pnand %p959_p7, %p953_p0 }
  0x3c   : > { %963 = shalt.err (!%p960_p9)
}
  0x3d   : > { %821 = dma.hbm_to_vmem [thread:$0]  (!%p1154_p10), %s1354_s3, 1024, %s1158_s6, [#allocation6], %s1068_s15, %s1068_s15, %s1069_s16  }
  0x3e   : > { %s1208_s14 = sadd.s32 1, %s1064_s21   ;;  %s29_s29 = sadd.s32 1, %s1060_s20 }
  0x3f   : > { %s26_s17 = ssub.s32 %s1064_s21, %s1208_s14  ;;  %p36_p12 = scmp.ne.s32.totalorder %s1060_s20, %s1056_s19 }
  0x40   : > { %p27_p11 = scmp.eq.s32.totalorder %s26_s17, 0  ;;  %p37_p1 = scmp.eq.s32.totalorder %s1064_s21, 0 }
  0x41   : > { %p1364_p2 = scmp.eq.s32.totalorder %s1127_s22, 3  ;;  %p832_p6 = scmp.lt.s32.totalorder %s1064_s21, 4 }
  0x42   : > { %s1224_s27 = scalar_select %p27_p11, %s1060_s20, %s29_s29  }
  0x43   : > { %p1218_p4 = por %p1364_p2, %p36_p12  ;;  %p38_p8 = por %p37_p1, %p36_p12 }
  0x44   : > { %s208_s30 = sand.u32 1, %s1060_s20   ;;  %s729_s6 = sshll.u32 %s1064_s21, 10 }
  0x45   : > { %s698_s7 = sshll.u32 %s208_s30, 6  ;;  %s1231_s8 = scalar_lea.hbm %s1351_s0, %s729_s6 }
  0x46   : > { %s212_s9 = scalar_lea.vmem [#allocation2], %s698_s7  ;;  %p1235_p10 = pnand %p832_p6, %p38_p8 }
  0x47   : > { %s219_s10 = sshll.u32 %s212_s9, 4  ;;  %s1239_s28 = scalar_lea.sflag [#allocation3], %s208_s30  ;;  %s1233_s10 = int_to_ptr.vmem [resolvable:$true] %s219_s10 }
  0x48   : > { %s964_s12 = scalar_lea.hbm %s1231_s8, 1024  ;;  %p966_p0 = pneg %p1235_p10 }
  0x49   : > { %p965_p13 = scmp.ne.s32.totalorder %s1231_s8, %s964_s12  ;;  %s969_s17 = scalar_lea.hbm %s1351_s0, 4096 }
  0x4a   : > { %p970_p7 = scmp.lt.u32.totalorder %s1231_s8, %s1351_s0  ;;  %p971_p9 = scmp.lt.u32.totalorder %s969_s17, %s964_s12 }
  0x4b   : > { %p967_p3 = pnand %p966_p0, %p965_p13  ;;  %p973_p11 = scmp.lt.u32.totalorder %s964_s12, %s1231_s8 }
  0x4c   : > { %p972_p12 = por %p971_p9, %p970_p7 }
  0x4d   : > { %p968_p5 = pneg %p967_p3 }
  0x4e   : > { %p974_p1 = por %p973_p11, %p972_p12 }
  0x50   : > { %p975_p2 = pnand %p974_p1, %p968_p5 }
  0x52   : > { %978 = shalt.err (!%p975_p2)
}
  0x53   : > { %s979_s30 = scalar_lea.vmem %s1233_s10, 1024  ;;  %s1070_s15 = smov [#allocation2]  }
  0x54   : > { %p980_p6 = scmp.ne.s32.totalorder %s1233_s10, %s979_s30  ;;  %s984_s16 = sshll.u32 %s1070_s15, 4  ;;  %s985_s16 = int_to_ptr.vmem [resolvable:$false] %s984_s16 }
  0x55   : > { %s986_s9 = scalar_lea.vmem %s985_s16, 2048  ;;  %p987_p3 = scmp.lt.s32.totalorder %s1233_s10, %s985_s16 }
  0x56   : > { %p982_p8 = pnand %p980_p6, %p966_p0  ;;  %p988_p7 = scmp.lt.s32.totalorder %s986_s9, %s979_s30 }
  0x58   : > { %p983_p13 = pneg %p982_p8  ;;  %p989_p9 = por %p988_p7, %p987_p3 }
  0x5a   : > { %p990_p12 = pnand %p989_p9, %p983_p13 }
  0x5c   : > { %993 = shalt.err (!%p990_p12)
}
  0x5d   : > { %s1071_s12 = smov 128   ;;  %s1072_s13 = smov 8  }
  0x5e   : > { %825 = dma.hbm_to_vmem [thread:$0]  (!%p1235_p10), %s1231_s8, 1024, %s1233_s10, %s1239_s28, %s1071_s12, %s1071_s12, %s1072_s13  }
  0x5f   : > { %p1367_p0 = scmp.ne.s32.totalorder %s1362_s26, 0 }
  0x60   : > { %s1270_s29 = sand.u32 (!%p1367_p0), 1, %s1056_s19   ;;  %p1368_p5 = scmp.ne.s32.totalorder (!%p1367_p0), %s1360_s24, 0 }
  0x61   : > { %231 = sbr.rel (%p1367_p0) target bundleno = 614 (0x266), region = 40  ;;  %s702_s17 = sshll.u32 (!%p1367_p0), %s1270_s29, 6 }
  0x62   : > { %s234_s7 = scalar_lea.sflag (!%p1367_p0), [#allocation3], %s1270_s29  ;;  %s1276_s6 = scalar_lea.vmem (!%p1367_p0), [#allocation2], %s702_s17 }
  0x68   : > { %1039 = dma.done.wait (%p1368_p5), %s234_s7, 1024  }
  0x69   : > { %1041 = vsyncadd (%p1368_p5), %s234_s7, 4294966272  ;;  %p1369_p10 = scmp.eq.s32.totalorder %s1127_s22, 0 }
  0x6b   : > { %1043 = dma.done.wait (%p1369_p10), [#allocation6], 2048   ;;  %p1370_p11 = pmov %p1369_p10 }
  0x6c   : > { %v876_v0 = vld [vmem:[#allocation5] sm:$0xff]   ;;  %v877_v1 = vld [vmem:[#allocation5 + $0x8] sm:$0xff]   ;;  %v878_v2 = vld [vmem:[#allocation5 + $0x10] sm:$0xff]   ;;  %s271_s11 = scalar_lea.vmem [#allocation8], %s702_s17  ;;  %s730_s30 = sshll.u32 %s1127_s22, 10 }
  0x6d   : > { %1045 = vsyncadd (%p1370_p11), [#allocation6], 4294965248  ;;  %755 = vmatprep.subr.bf16.mxu0 %v876_v0  ;;  %v879_v3 = vld [vmem:[#allocation5 + $0x18] sm:$0xff]   ;;  %v275_v4 = vld [vmem:[%s1276_s6] sm:$0xff]  ;;  %s601_s28 = sshll.u32 %s271_s11, 4  ;;  %s1308_s9 = scalar_lea.hbm %s1356_s5, %s730_s30  ;;  %s1303_s28 = int_to_ptr.vmem [resolvable:$true] %s601_s28 }
  0x6e   : > { %756 = vmatpush3.bf16.msra.mxu0 %v876_v0  ;;  %v276_v5 = vld [vmem:[%s1276_s6 + $0x8] sm:$0xff]  ;;  %v880_v7 = vld [vmem:[#allocation5 + $0x20] sm:$0xff]   ;;  %v886_v10 = vld [vmem:[#allocation7 + $0x10] sm:$0xff]   ;;  %s588_s22 = scalar_lea.sflag [#allocation4], %s1270_s29  ;;  %s994_s12 = scalar_lea.vmem %s1303_s28, 1024 }
  0x6f   : > { %757 = vmatprep.subr.bf16.mxu0 %v877_v1  ;;  %v283_v6 = vpack.c.bf16 %v276_v5, %v275_v4  ;;  %v884_v8 = vld [vmem:[#allocation7] sm:$0xff]   ;;  %v885_v9 = vld [vmem:[#allocation7 + $0x8] sm:$0xff]   ;;  %v882_v12 = vld [vmem:[#allocation5 + $0x30] sm:$0xff]   ;;  %p995_p1 = scmp.ne.s32.totalorder %s1303_s28, %s994_s12  ;;  %s1073_s13 = smov [#allocation8]  }
  0x70   : > { %779 = vmatprep.subr.bf16.mxu1 %v884_v8  ;;  %v881_v11 = vld [vmem:[#allocation5 + $0x28] sm:$0xff]   ;;  %v883_v13 = vld [vmem:[#allocation5 + $0x38] sm:$0xff]   ;;  %v277_v14 = vld [vmem:[%s1276_s6 + $0x10] sm:$0xff]  ;;  %s998_s17 = sshll.u32 %s1073_s13, 4  ;;  %s999_s17 = int_to_ptr.vmem [resolvable:$false] %s998_s17 }
  0x71   : > { %771 = vmatprep.mubr.bf16.mxu0 %v283_v6  ;;  %780 = vmatpush3.bf16.msra.mxu1 %v884_v8  ;;  %v278_v15 = vld [vmem:[%s1276_s6 + $0x18] sm:$0xff]  ;;  %v279_v16 = vld [vmem:[%s1276_s6 + $0x20] sm:$0xff]  ;;  %v280_v17 = vld [vmem:[%s1276_s6 + $0x28] sm:$0xff]  ;;  %p996_p2 = pnand %p995_p1, %p1218_p4  ;;  %s1000_s7 = scalar_lea.vmem %s999_s17, 2048 }
  0x72   : > { %758 = vmatpush3.bf16.msra.mxu0 %v877_v1  ;;  %781 = vmatprep.subr.bf16.mxu1 %v885_v9  ;;  %v284_v18 = vpack.c.bf16 %v278_v15, %v277_v14  ;;  %v285_v19 = vpack.c.bf16 %v280_v17, %v279_v16  ;;  %v281_v20 = vld [vmem:[%s1276_s6 + $0x30] sm:$0xff]  ;;  %v282_v21 = vld [vmem:[%s1276_s6 + $0x38] sm:$0xff]  ;;  %v888_v24 = vld [vmem:[#allocation7 + $0x20] sm:$0xff]   ;;  %p1001_p8 = scmp.lt.s32.totalorder %s1303_s28, %s999_s17  ;;  %p1002_p13 = scmp.lt.s32.totalorder %s1000_s7, %s994_s12 }
  0x73   : > { %759 = vmatprep.subr.bf16.mxu0 %v878_v2  ;;  %v286_v22 = vpack.c.bf16 %v282_v21, %v281_v20  ;;  %v887_v23 = vld [vmem:[#allocation7 + $0x18] sm:$0xff]   ;;  %v889_v25 = vld [vmem:[#allocation7 + $0x28] sm:$0xff]   ;;  %v890_v26 = vld [vmem:[#allocation7 + $0x30] sm:$0xff]   ;;  %p997_p6 = pneg %p996_p2 }
  0x74   : > { %v891_v27 = vld [vmem:[#allocation7 + $0x38] sm:$0xff]   ;;  %v706_v28 = vld [vmem:[%s1353_s2] ss:$0 sm:$0xff]  ;;  %p1003_p3 = por %p1002_p13, %p1001_p8 }
  0x75   : > { %782 = vmatpush3.bf16.msra.mxu1 %v885_v9  ;;  %v715_v1 = vld [vmem:[%s1355_s4] ss:$0 sm:$0xff] }
  0x76   : > { %760 = vmatpush3.bf16.msra.mxu0 %v878_v2  ;;  %783 = vmatprep.subr.bf16.mxu1 %v886_v10  ;;  %p1004_p7 = pnand %p1003_p3, %p997_p6 }
  0x77   : > { %761 = vmatprep.subr.bf16.mxu0 %v879_v3 }
  0x79   : > { %784 = vmatpush3.bf16.msra.mxu1 %v886_v10 }
  0x7a   : > { %762 = vmatpush3.bf16.msra.mxu0 %v879_v3  ;;  %785 = vmatprep.subr.bf16.mxu1 %v887_v23 }
  0x7b   : > { %763 = vmatprep.subr.bf16.mxu0 %v880_v7 }
  0x7d   : > { %786 = vmatpush3.bf16.msra.mxu1 %v887_v23 }
  0x7e   : > { %764 = vmatpush3.bf16.msra.mxu0 %v880_v7  ;;  %787 = vmatprep.subr.bf16.mxu1 %v888_v24 }
  0x7f   : > { %765 = vmatprep.subr.bf16.mxu0 %v881_v11 }
  0x81   : > { %788 = vmatpush3.bf16.msra.mxu1 %v888_v24 }
  0x82   : > { %766 = vmatpush3.bf16.msra.mxu0 %v881_v11  ;;  %789 = vmatprep.subr.bf16.mxu1 %v889_v25 }
  0x83   : > { %767 = vmatprep.subr.bf16.mxu0 %v882_v12 }
  0x85   : > { %790 = vmatpush3.bf16.msra.mxu1 %v889_v25 }
  0x86   : > { %768 = vmatpush3.bf16.msra.mxu0 %v882_v12  ;;  %791 = vmatprep.subr.bf16.mxu1 %v890_v26 }
  0x87   : > { %769 = vmatprep.subr.bf16.mxu0 %v883_v13 }
  0x89   : > { %792 = vmatpush3.bf16.msra.mxu1 %v890_v26 }
  0x8a   : > { %770 = vmatpush3.bf16.msra.mxu0 %v883_v13  ;;  %793 = vmatprep.subr.bf16.mxu1 %v891_v27 }
  0x8d   : > { %772 = vmatmul.mubr.bf16.vlgmr.msra.gmra.mrb[0].mxu0 %v284_v18  ;;  %794 = vmatpush3.bf16.msra.mxu1 %v891_v27 }
  0x8e   : > { %775 = vmatprep.mubr.bf16.mxu0 %v285_v19 }
  0x95   : > { %776 = vmatmul.mubr.bf16.gmra.mrb[4].mxu0 %v286_v22 }
 0x160   : > { %v773_v29 = vpop.f32.mrb[0].mxu0 }
 0x161   : > { %v401_v30 = vadd.f32 %v773_v29, %v706_v28  ;;  %v392_v31 = vpop.f32.mrb[1].mxu0 }
 0x162   : > { %v393_v32 = vadd.f32 %v706_v28, %v392_v31  ;;  %v774_v33 = vpop.f32.mrb[2].mxu0 }
 0x163   : > { %892 = vtanh.f32 %v401_v30  ;;  %v404_v34 = vadd.f32 %v774_v33, %v706_v28  ;;  %v395_v35 = vpop.f32.mrb[3].mxu0 }
 0x164   : > { %894 = vtanh.f32 %v393_v32  ;;  %v396_v36 = vadd.f32 %v706_v28, %v395_v35 }
 0x165   : > { %896 = vtanh.f32 %v404_v34 }
 0x166   : > { %898 = vtanh.f32 %v396_v36 }
 0x168   : > { %v777_v37 = vpop.f32.mrb[4].mxu0 }
 0x169   : > { %v417_v38 = vadd.f32 %v777_v37, %v706_v28  ;;  %v408_v39 = vpop.f32.mrb[5].mxu0 }
 0x16a   : > { %v409_v40 = vadd.f32 %v706_v28, %v408_v39  ;;  %v778_v41 = vpop.f32.mrb[6].mxu0 }
 0x16b   : > { %900 = vtanh.f32 %v417_v38  ;;  %v420_v42 = vadd.f32 %v778_v41, %v706_v28  ;;  %v411_v43 = vpop.f32.mrb[7].mxu0 }
 0x16c   : > { %902 = vtanh.f32 %v409_v40  ;;  %v412_v44 = vadd.f32 %v706_v28, %v411_v43 }
 0x16d   : > { %v893_v45 = vpop.eup %892  ;;  %904 = vtanh.f32 %v420_v42 }
 0x16e   : > { %v895_v46 = vpop.eup %894  ;;  %906 = vtanh.f32 %v412_v44  ;;  %v433_v49 = vsub.f32 %v401_v30, %v893_v45 }
 0x16f   : > { %v897_v47 = vpop.eup %896  ;;  %v431_v51 = vsub.f32 %v393_v32, %v895_v46 }
 0x170   : > { %v899_v48 = vpop.eup %898  ;;  %v434_v50 = vsub.f32 %v404_v34, %v897_v47 }
 0x171   : > { %v432_v52 = vsub.f32 %v396_v36, %v899_v48 }
 0x172   : > { %v440_v53 = vpack.c.bf16 %v434_v50, %v433_v49 }
 0x173   : > { %v439_v54 = vpack.c.bf16 %v432_v52, %v431_v51 }
 0x175   : > { %v901_v55 = vpop.eup %900  ;;  %795 = vmatprep.mubr.bf16.mxu1 %v439_v54 }
 0x176   : > { %v903_v56 = vpop.eup %902  ;;  %796 = vmatmul.mubr.bf16.vlgmr.msra.gmra.mrb[0].mxu1 %v440_v53  ;;  %v437_v59 = vsub.f32 %v417_v38, %v901_v55 }
 0x177   : > { %v905_v57 = vpop.eup %904  ;;  %v435_v61 = vsub.f32 %v409_v40, %v903_v56 }
 0x178   : > { %v907_v58 = vpop.eup %906  ;;  %v438_v60 = vsub.f32 %v420_v42, %v905_v57 }
 0x179   : > { %v436_v62 = vsub.f32 %v412_v44, %v907_v58 }
 0x17a   : > { %v442_v63 = vpack.c.bf16 %v438_v60, %v437_v59 }
 0x17b   : > { %v441_v0 = vpack.c.bf16 %v436_v62, %v435_v61 }
 0x17d   : > { %799 = vmatprep.mubr.bf16.mxu1 %v441_v0 }
 0x17e   : > { %800 = vmatmul.mubr.bf16.gmra.mrb[4].mxu1 %v442_v63 }
 0x249   : > { %v797_v2 = vpop.f32.mrb[0].mxu1 }
 0x24a   : > { %v557_v3 = vadd.f32 %v797_v2, %v715_v1  ;;  %v548_v4 = vpop.f32.mrb[1].mxu1 }
 0x24b   : > { %v549_v5 = vadd.f32 %v715_v1, %v548_v4  ;;  %v798_v6 = vpop.f32.mrb[2].mxu1 }
 0x24c   : > { %581 = vst [vmem:[%s271_s11 + $0x10] sm:$0xff] %v557_v3  ;;  %v560_v7 = vadd.f32 %v798_v6, %v715_v1  ;;  %v551_v8 = vpop.f32.mrb[3].mxu1 }
 0x24d   : > { %579 = vst [vmem:[%s271_s11] sm:$0xff] %v549_v5  ;;  %v552_v9 = vadd.f32 %v715_v1, %v551_v8 }
 0x24e   : > { %582 = vst [vmem:[%s271_s11 + $0x18] sm:$0xff] %v560_v7 }
 0x24f   : > { %580 = vst [vmem:[%s271_s11 + $0x8] sm:$0xff] %v552_v9 }
 0x251   : > { %v801_v10 = vpop.f32.mrb[4].mxu1 }
 0x252   : > { %v573_v11 = vadd.f32 %v801_v10, %v715_v1  ;;  %v564_v12 = vpop.f32.mrb[5].mxu1 }
 0x253   : > { %v565_v13 = vadd.f32 %v715_v1, %v564_v12  ;;  %v802_v14 = vpop.f32.mrb[6].mxu1 }
 0x254   : > { %585 = vst [vmem:[%s271_s11 + $0x30] sm:$0xff] %v573_v11  ;;  %v576_v15 = vadd.f32 %v802_v14, %v715_v1  ;;  %v567_v16 = vpop.f32.mrb[7].mxu1 }
 0x255   : > { %583 = vst [vmem:[%s271_s11 + $0x20] sm:$0xff] %v565_v13  ;;  %v568_v17 = vadd.f32 %v715_v1, %v567_v16 }
 0x256   : > { %586 = vst [vmem:[%s271_s11 + $0x38] sm:$0xff] %v576_v15 }
 0x257   : > { %584 = vst [vmem:[%s271_s11 + $0x28] sm:$0xff] %v568_v17 }
 0x258   : > { %1007 = shalt.err (!%p1004_p7)
}
 0x259   : > { %s1008_s6 = scalar_lea.hbm %s1308_s9, 1024  ;;  %s1012_s8 = scalar_lea.hbm %s1356_s5, 4096 }
 0x25a   : > { %p1009_p9 = scmp.ne.s32.totalorder %s1308_s9, %s1008_s6  ;;  %p1013_p5 = scmp.lt.u32.totalorder %s1308_s9, %s1356_s5 }
 0x25b   : > { %p1014_p10 = scmp.lt.u32.totalorder %s1012_s8, %s1008_s6  ;;  %p1016_p1 = scmp.lt.u32.totalorder %s1008_s6, %s1308_s9 }
 0x25c   : > { %p1010_p12 = pnand %p1009_p9, %p1218_p4 }
 0x25d   : > { %p1015_p11 = por %p1014_p10, %p1013_p5 }
 0x25e   : > { %p1011_p0 = pneg %p1010_p12 }
 0x25f   : > { %p1017_p2 = por %p1016_p1, %p1015_p11 }
 0x261   : > { %p1018_p6 = pnand %p1017_p2, %p1011_p0 }
 0x263   : > { %1021 = shalt.err (!%p1018_p6)
}
 0x264   : > { %s1074_s30 = smov 128   ;;  %s1075_s15 = smov 8  }
 0x265   : > { %813 = dma.vmem_to_hbm [thread:$0]  (%p1218_p4), %s1303_s28, 1024, %s1308_s9, %s588_s22, %s1074_s30, %s1074_s30, %s1075_s15  }
 0x266 PF: > { %p835_p8 = scmp.ge.s32.totalorder %s1064_s21, 2  ;;  %s616_s16 = sand.u32 1, %s1052_s18  }
 0x267   : > { %p1371_p13 = scmp.ne.s32.totalorder %s1361_s25, 0  ;;  %s617_s12 = scalar_lea.sflag [#allocation4], %s616_s16 }
 0x269   : > { %p827_p3 = pnand %p835_p8, %p1371_p13 }
 0x26b   : > { %1047 = dma.done.wait (!%p827_p3), %s617_s12, 1024  }
 0x26c   : > { %1049 = vsyncadd (!%p827_p3), %s617_s12, 4294966272  ;;  %p19_p7 = scmp.ge.s32.totalorder %s1208_s14, 6   ;;  %s1372_s18 = smov %s1056_s19 }
 0x26d   : > { %s1373_s19 = smov %s1060_s20  ;;  %s1374_s20 = smov %s1224_s27 }
 0x26e   : > { %s1375_s21 = smov %s1208_s14  ;;  %21 = sbr.rel (!%p19_p7) target bundleno = 6 (0x6), region = 93 }
 0x275   :  { %622 = vsyncpa [#allocation3], 1 }
 0x276   :  { %624 = vsyncpa [#allocation3 + $0x1], 1 }
 0x277   :  { %625 = vsyncpa [#allocation6], 1 }
 0x278   :  { %626 = vsyncpa [#allocation4], 1 }
 0x279   :  { %628 = vsyncpa [#allocation4 + $0x1], 1 }

</bundles_post_ra>
